<compile_context>
chip_gen: v5e
topology: v5e:2x2
jax: 0.10.0
libtpu: 0.0.40
codegen_flags: <defaults>
</compile_context>

<pallas_src>
import functools

import jax
import jax.numpy as jnp
from jax import lax
from jax.experimental import pallas as pl
from jax.experimental.pallas import tpu as pltpu

INF = 1e12   # finite "inf", matching GeoTransformer's LearnableLogOptimalTransport
LANE = 128


# ---------------- fused L2-normalize + gather + fusion MLP + scatter ----------------

def _l2norm_gather_fuse_kernel(feats_ref, img_ref, selc_ref, selr_ref,
                               w_ref, b_ref, norm_ref, fuse_ref):
    # F.normalize(x, p=2, dim=1): x / max(||x||_2, 1e-12)  (rsqrt*mul, EUP)
    x = feats_ref[...]
    inv = lax.rsqrt(jnp.maximum(jnp.sum(x * x, axis=-1, keepdims=True), 1e-24))
    xn = x * inv

    ntot = x.shape[0]
    p2 = img_ref.shape[0]

    # One-hot gather of selected rows / scatter of fused rows — fully vectorized,
    # no per-row dynamic slices.
    # TODO(synk): duplicate selected indices would SUM here instead of torch's
    # "last write wins"; gt-pair indices are unique in practice.
    oh_g = (selc_ref[...] ==
            lax.broadcasted_iota(jnp.int32, (p2, ntot), 1)).astype(jnp.float32)   # (p2, ntot)
    oh_s = (lax.broadcasted_iota(jnp.int32, (ntot, p2), 0) ==
            selr_ref[...]).astype(jnp.float32)                                    # (ntot, p2)

    # exact row pick (one-hot x values)
    pcd_sel = jnp.dot(oh_g, xn, preferred_element_type=jnp.float32)               # (p2, dc)

    # self.mlp(cat([pcd, img], dim=1)): bf16 MXU inputs, f32 accumulation.
    # (bf16 weights are a deliberate accuracy/DMA tradeoff vs the torch f32 Linear.)
    fuse_in = jnp.concatenate([pcd_sel, img_ref[...]], axis=1)                    # (p2, 512)
    fused = jnp.dot(fuse_in.astype(jnp.bfloat16), w_ref[...],
                    preferred_element_type=jnp.float32) + b_ref[...]              # (p2, 256)
    fuse_ref[...] = fused.astype(fuse_ref.dtype)

    # scatter fused rows back into the normalized features (torch in-place write)
    scattered = jnp.dot(oh_s, fused, preferred_element_type=jnp.float32)          # (ntot, dc)
    sel_mask = jnp.sum(oh_s, axis=1, keepdims=True)                               # (ntot, 1)
    norm_ref[...] = jnp.where(sel_mask > 0.0, scattered, xn).astype(norm_ref.dtype)


def l2norm_gather_fuse(feats, img, sel, w_bf16, bias):
    """F.normalize + selected-row gather + nn.Linear(512,256) + scatter-back,
    fused into one pallas_call (whole arrays resident in VMEM at these sizes).
    TODO(synk): for production coarse-N, tile the normalize over 512-1024 row blocks."""
    ntot, dc = feats.shape
    p2 = img.shape[0]
    din, dout = w_bf16.shape
    sel_col = sel.astype(jnp.int32)[:, None]    # (p2, 1)
    sel_row = sel.astype(jnp.int32)[None, :]    # (1, p2)
    return pl.pallas_call(
        _l2norm_gather_fuse_kernel,
        out_shape=(jax.ShapeDtypeStruct((ntot, dc), feats.dtype),
                   jax.ShapeDtypeStruct((p2, dout), feats.dtype)),
        grid=(1,),
        in_specs=[pl.BlockSpec((ntot, dc), lambda i: (0, 0)),
                  pl.BlockSpec((p2, dc), lambda i: (0, 0)),
                  pl.BlockSpec((p2, 1), lambda i: (0, 0)),
                  pl.BlockSpec((1, p2), lambda i: (0, 0)),
                  pl.BlockSpec((din, dout), lambda i: (0, 0)),
                  pl.BlockSpec((1, dout), lambda i: (0, 0))],
        out_specs=(pl.BlockSpec((ntot, dc), lambda i: (0, 0)),
                   pl.BlockSpec((p2, dout), lambda i: (0, 0))),
        compiler_params=pltpu.CompilerParams(
            dimension_semantics=("arbitrary",)),
    )(feats, img, sel_col, sel_row, w_bf16, bias)


# ------------------- fused knn matching scores + Sinkhorn OT -------------------

def _match_ot_kernel(ref_ref, src_ref, rm_ref, cm_ref, alpha_ref, o_ref,
                     *, n, m, d, num_iters):
    tb, n1, _ = ref_ref.shape            # n1 = n + 1 (dustbin row, zeros)
    mp = o_ref.shape[2]                  # lane-dense padded column count (128)

    ref = ref_ref[...]                   # (tb, n1, d) f32
    src = src_ref[...]                   # (tb, m, d)  f32, UNPADDED from HBM
    rm = rm_ref[...]                     # (tb, n1, 1) f32: valid rows=1, dustbin=1, masked=0
    cm = cm_ref[...]                     # (tb, 1, mp) f32: valid cols=1, dustbin=1, masked/pad=0
    alpha = alpha_ref[0, 0]              # SMEM scalar

    # Widen src to mp rows in VMEM (sublane concat at offset m, multiple of 8);
    # no padded f32 copy ever hits HBM.  Extra matmul columns are overwritten below.
    src_w = jnp.concatenate([src, jnp.zeros((tb, mp - m, d), src.dtype)], axis=1)

    # matching_scores = einsum('bnd,bmd->bnm', ref, src) / sqrt(d)  (f32 MXU — the MXU
    # is not the binding unit of this kernel, the Sinkhorn EUP/XLU work is)
    s = lax.dot_general(ref, src_w, (((2,), (2,)), ((0,), (0,))),
                        preferred_element_type=jnp.float32) * (1.0 / d ** 0.5)

    # Dustbin / mask fill built from the two small iotas also needed for log_mu/log_nu.
    row_ids1 = lax.broadcasted_iota(jnp.int32, (tb, n1, 1), 1)
    col_ids1 = lax.broadcasted_iota(jnp.int32, (tb, 1, mp), 2)
    is_dust = (row_ids1 == n) | (col_ids1 == m)          # broadcasts to (tb, n1, mp)
    valid = (rm * cm) > 0.0
    padded = jnp.where(valid, jnp.where(is_dust, alpha, s), -INF)

    # Log-marginals; clamp valid counts to >= 1 to guard log(0) for degenerate patches.
    nr = jnp.maximum(jnp.sum(rm, axis=1, keepdims=True) - 1.0, 1.0)   # (tb, 1, 1)
    nc = jnp.maximum(jnp.sum(cm, axis=2, keepdims=True) - 1.0, 1.0)   # (tb, 1, 1)
    norm = -jnp.log(nr + nc)                                          # (tb, 1, 1)

    log_mu = jnp.where(row_ids1 == n, jnp.log(nc) + norm, norm)
    log_mu = jnp.where(rm > 0.0, log_mu, -INF)            # (tb, n1, 1)
    log_nu = jnp.where(col_ids1 == m, jnp.log(nr) + norm, norm)
    log_nu = jnp.where(cm > 0.0, log_nu, -INF)            # (tb, 1, mp); lane pads -> -INF

    def lse(x, axis):
        mx = jnp.max(x, axis=axis, keepdims=True)
        return mx + jnp.log(jnp.sum(jnp.exp(x - mx), axis=axis, keepdims=True))

    def body(_, carry):
        u, v = carry
        u = log_mu - lse(padded + v, axis=2)   # (tb, n1, 1)
        v = log_nu - lse(padded + u, axis=1)   # (tb, 1, mp)
        return (u, v)

    # unroll=2: keeps LLO visibility while bounding code size / vreg spill risk vs a
    # full 10x unroll (padded alone is ~3 vregs per batch item, live across the loop).
    u, v = lax.fori_loop(0, num_iters, body,
                         (jnp.zeros_like(log_mu), jnp.zeros_like(log_nu)),
                         unroll=2)

    o_ref[...] = (padded + u + v - norm).astype(o_ref.dtype)


def knn_match_and_optimal_transport(ref_knn_feats, src_knn_feats,
                                    ref_knn_masks, src_knn_masks,
                                    alpha, num_iters, batch_tile=None):
    """einsum('bnd,bmd->bnm')/sqrt(D) followed by LearnableLogOptimalTransport,
    fused into one Pallas kernel.  Returns the lane-dense (b, n+1, 128) slab
    (pad columns sit at ~-INF); slice [:, :, :m+1] only if the consumer needs it."""
    b, n, d = ref_knn_feats.shape
    m = src_knn_feats.shape[1]
    n1 = n + 1
    mp = max(LANE, pl.cdiv(m + 1, LANE) * LANE)
    tb = b if batch_tile is None else min(batch_tile, b)
    assert b % tb == 0

    # Only the single dustbin row of ref is padded host-side (tiny); src goes in
    # unpadded — all widening / alpha / -INF fill happens in VMEM inside the kernel.
    ref_pad = jnp.concatenate(
        [ref_knn_feats.astype(jnp.float32), jnp.zeros((b, 1, d), jnp.float32)], axis=1)
    src_in = src_knn_feats.astype(jnp.float32)
    rm = jnp.concatenate([ref_knn_masks.astype(jnp.float32),
                          jnp.ones((b, 1), jnp.float32)], axis=1)[:, :, None]  # (b, n1, 1)
    cm = (jnp.zeros((b, 1, mp), jnp.float32)
          .at[:, 0, :m].set(src_knn_masks.astype(jnp.float32))
          .at[:, 0, m].set(1.0))
    alpha_arr = jnp.full((1, 1), alpha, jnp.float32)

    return pl.pallas_call(
        functools.partial(_match_ot_kernel, n=n, m=m, d=d, num_iters=num_iters),
        out_shape=jax.ShapeDtypeStruct((b, n1, mp), jnp.float32),
        grid=(b // tb,),
        in_specs=[pl.BlockSpec((tb, n1, d), lambda i: (i, 0, 0)),
                  pl.BlockSpec((tb, m, d), lambda i: (i, 0, 0)),
                  pl.BlockSpec((tb, n1, 1), lambda i: (i, 0, 0)),
                  pl.BlockSpec((tb, 1, mp), lambda i: (i, 0, 0)),
                  pl.BlockSpec(memory_space=pltpu.MemorySpace.SMEM)],
        out_specs=pl.BlockSpec((tb, n1, mp), lambda i: (i, 0, 0)),
        compiler_params=pltpu.CompilerParams(
            dimension_semantics=("parallel",),        # shards batch over v7x's 2 TCs
            vmem_limit_bytes=32 * 1024 * 1024),
    )(ref_pad, src_in, rm, cm, alpha_arr)


# ----------------------------- pure-JAX references -----------------------------

def _ot_reference_jnp(ref_feats, src_feats, ref_masks, src_masks, alpha, num_iters):
    b, n, d = ref_feats.shape
    m = src_feats.shape[1]
    s = jnp.einsum('bnd,bmd->bnm', ref_feats, src_feats) / d ** 0.5
    rm = jnp.concatenate([ref_masks, jnp.ones((b, 1), bool)], axis=1).astype(jnp.float32)
    cm = jnp.concatenate([src_masks, jnp.ones((b, 1), bool)], axis=1).astype(jnp.float32)
    padded = jnp.full((b, n + 1, m + 1), alpha, jnp.float32).at[:, :n, :m].set(s)
    valid = (rm[:, :, None] * cm[:, None, :]) > 0
    padded = jnp.where(valid, padded, -INF)
    nr = jnp.maximum(jnp.sum(rm[:, :n], axis=1), 1.0)
    nc = jnp.maximum(jnp.sum(cm[:, :m], axis=1), 1.0)
    norm = -jnp.log(nr + nc)
    log_mu = jnp.where(jnp.arange(n + 1)[None, :] == n,
                       jnp.log(nc)[:, None] + norm[:, None], norm[:, None])
    log_mu = jnp.where(rm > 0, log_mu, -INF)[:, :, None]
    log_nu = jnp.where(jnp.arange(m + 1)[None, :] == m,
                       jnp.log(nr)[:, None] + norm[:, None], norm[:, None])
    log_nu = jnp.where(cm > 0, log_nu, -INF)[:, None, :]

    def lse(x, axis):
        mx = jnp.max(x, axis=axis, keepdims=True)
        return mx + jnp.log(jnp.sum(jnp.exp(x - mx), axis=axis, keepdims=True))

    u = jnp.zeros_like(log_mu)
    v = jnp.zeros_like(log_nu)
    for _ in range(num_iters):
        u = log_mu - lse(padded + v, axis=2)
        v = log_nu - lse(padded + u, axis=1)
    return padded + u + v - norm[:, None, None]


# ----------------------------- driver -----------------------------

if __name__ == "__main__":
    key = jax.random.PRNGKey(0)
    kc, ks, ki1, ki2, kw, kb, kf1, kf2 = jax.random.split(key, 8)

    # Small shapes consistent with the forward pass
    n_ref_c, n_src_c = 12, 10      # coarse point counts (ref / src)
    d_c = 256                      # GeometricTransformer output feature dim
    p_sel = 8                      # selected gt node pairs fed to the fusion MLP
    num_corr = 8                   # node correspondences (batch of the einsum)
    k_patch = 16                   # num_points_in_patch
    d_f = 64                       # fine feature dim (feats_f.shape[1])
    num_sinkhorn_iters = 10        # num_sinkhorn_iterations

    ref_feats_c = jax.random.normal(kc, (n_ref_c, d_c), jnp.float32)
    src_feats_c = jax.random.normal(ks, (n_src_c, d_c), jnp.float32)
    img_patch_ref_feats = jax.random.normal(ki1, (p_sel, d_c), jnp.float32)
    img_patch_src_feats = jax.random.normal(ki2, (p_sel, d_c), jnp.float32)

    # self.mlp = nn.Linear(512, 256) — deterministic synthetic parameters,
    # weight pre-cast to bf16 ONCE at parameter level (MXU native).
    w = jax.random.normal(kw, (512, 256), jnp.float32) * (1.0 / 512 ** 0.5)
    w_bf16 = w.astype(jnp.bfloat16)
    bias = jax.random.normal(kb, (1, 256), jnp.float32) * 0.01
    alpha = jnp.float32(1.0)       # optimal-transport dustbin parameter

    # selected_gt_pair indices (deterministic stand-in for the gt-pair selection)
    sel_ref_idx = jnp.arange(p_sel) % n_ref_c
    sel_src_idx = (jnp.arange(p_sel) * 3) % n_src_c

    # --- hot path 1 (fused): L2 norm + gather + fusion MLP + scatter, ONE kernel ---
    feats_c_all = jnp.concatenate([ref_feats_c, src_feats_c], axis=0)          # (22, 256)
    img_all = jnp.concatenate([img_patch_ref_feats, img_patch_src_feats], 0)   # (16, 256)
    sel_all = jnp.concatenate([sel_ref_idx, sel_src_idx + n_ref_c]).astype(jnp.int32)

    feats_c_norm_all, fuse_out = l2norm_gather_fuse(feats_c_all, img_all, sel_all,
                                                    w_bf16, bias)
    ref_feats_c_norm = feats_c_norm_all[:n_ref_c]
    src_feats_c_norm = feats_c_norm_all[n_ref_c:]
    ref_feats_c_fuse = fuse_out[:p_sel]
    src_feats_c_fuse = fuse_out[p_sel:]

    # --- hot path 2 (fused): matching scores + learnable log-space Sinkhorn OT ---
    ref_node_corr_knn_feats = jax.random.normal(kf1, (num_corr, k_patch, d_f), jnp.float32)
    src_node_corr_knn_feats = jax.random.normal(kf2, (num_corr, k_patch, d_f), jnp.float32)
    ref_knn_masks = jnp.ones((num_corr, k_patch), dtype=bool).at[0, -2:].set(False)
    src_knn_masks = jnp.ones((num_corr, k_patch), dtype=bool).at[0, -3:].set(False)

    ot_slab = knn_match_and_optimal_transport(
        ref_node_corr_knn_feats, src_node_corr_knn_feats,
        ref_knn_masks, src_knn_masks, alpha, num_sinkhorn_iters)
    # Downstream fine matching could consume the lane-dense slab directly (pad cols
    # are ~-INF); slice here only to recover the module's (b, n+1, m+1) output shape.
    ot_scores = ot_slab[:, :, :k_patch + 1]

    for t in (feats_c_norm_all, fuse_out, ot_slab):
        jax.block_until_ready(t)

    # --- shape checks ---
    assert ref_feats_c_norm.shape == (n_ref_c, d_c)
    assert src_feats_c_norm.shape == (n_src_c, d_c)
    assert ref_feats_c_fuse.shape == (p_sel, 256)
    assert src_feats_c_fuse.shape == (p_sel, 256)
    assert ot_scores.shape == (num_corr, k_patch + 1, k_patch + 1)

    # --- reference checks: fused norm / gather / MLP / scatter ---
    xn_ref = feats_c_all / jnp.maximum(
        jnp.linalg.norm(feats_c_all, axis=1, keepdims=True), 1e-12)
    fuse_in_ref = jnp.concatenate([xn_ref[sel_all], img_all], axis=1)
    fuse_ref_np = jnp.dot(fuse_in_ref.astype(jnp.bfloat16), w_bf16,
                          preferred_element_type=jnp.float32) + bias
    norm_ref_np = xn_ref.at[sel_all].set(fuse_ref_np)
    assert bool(jnp.allclose(fuse_out, fuse_ref_np, rtol=2e-2, atol=2e-2))
    assert bool(jnp.allclose(feats_c_norm_all, norm_ref_np, rtol=2e-2, atol=2e-2))

    not_sel = jnp.ones((feats_c_all.shape[0],), bool).at[sel_all].set(False)
    row_norms = jnp.sqrt(jnp.sum(feats_c_norm_all ** 2, axis=1))
    assert bool(jnp.all(jnp.where(not_sel, jnp.abs(row_norms - 1.0) < 1e-2, True)))

    # --- reference checks: fused matching + optimal transport ---
    ot_ref = _ot_reference_jnp(ref_node_corr_knn_feats, src_node_corr_knn_feats,
                               ref_knn_masks, src_knn_masks, alpha, num_sinkhorn_iters)
    assert bool(jnp.all(jnp.isfinite(ot_scores)))
    assert bool(jnp.allclose(ot_scores, ot_ref, rtol=1e-2, atol=1e-2))

    pr = jnp.concatenate([ref_knn_masks, jnp.ones((num_corr, 1), bool)], axis=1)
    pc = jnp.concatenate([src_knn_masks, jnp.ones((num_corr, 1), bool)], axis=1)
    valid_cells = pr[:, :, None] & pc[:, None, :]
    assert bool(jnp.all(jnp.where(valid_cells, jnp.abs(ot_scores) < 1e6, True)))
    assert bool(jnp.all(jnp.where(~valid_cells, ot_scores < -1e11, True)))

    print("KERNEL_OK")
</pallas_src>

<mosaic_0001>
module attributes {stable_mosaic.version = 11 : i64} {
  func.func @_l2norm_gather_fuse_kernel(%arg0: i32, %arg1: memref<22x256xf32, #tpu.memory_space<vmem>>, %arg2: memref<16x256xf32, #tpu.memory_space<vmem>>, %arg3: memref<16x1xi32, #tpu.memory_space<vmem>>, %arg4: memref<1x16xi32, #tpu.memory_space<vmem>>, %arg5: memref<512x256xbf16, #tpu.memory_space<vmem>>, %arg6: memref<1x256xf32, #tpu.memory_space<vmem>>, %arg7: memref<22x256xf32, #tpu.memory_space<vmem>>, %arg8: memref<16x256xf32, #tpu.memory_space<vmem>>) attributes {dimension_semantics = [#tpu.dimension_semantics<arbitrary>], iteration_bounds = array<i64: 1>, scalar_prefetch = 0 : i64, scratch_operands = 0 : i64, tpu.core_type = #tpu.core_type<tc>, window_params = [{pipeline_mode = #tpu.pipeline_mode<synchronous>, transform_indices = @transform_0, window_bounds = array<i64: 22, 256>}, {pipeline_mode = #tpu.pipeline_mode<synchronous>, transform_indices = @transform_1, window_bounds = array<i64: 16, 256>}, {pipeline_mode = #tpu.pipeline_mode<synchronous>, transform_indices = @transform_2, window_bounds = array<i64: 16, 1>}, {pipeline_mode = #tpu.pipeline_mode<synchronous>, transform_indices = @transform_3, window_bounds = array<i64: 1, 16>}, {pipeline_mode = #tpu.pipeline_mode<synchronous>, transform_indices = @transform_4, window_bounds = array<i64: 512, 256>}, {pipeline_mode = #tpu.pipeline_mode<synchronous>, transform_indices = @transform_5, window_bounds = array<i64: 1, 256>}, {pipeline_mode = #tpu.pipeline_mode<synchronous>, transform_indices = @transform_6, window_bounds = array<i64: 22, 256>}, {pipeline_mode = #tpu.pipeline_mode<synchronous>, transform_indices = @transform_7, window_bounds = array<i64: 16, 256>}]} {
    %c0 = arith.constant 0 : index
    %c0_0 = arith.constant 0 : index
    %0 = vector.load %arg1[%c0, %c0_0] : memref<22x256xf32, #tpu.memory_space<vmem>>, vector<22x256xf32>
    %1 = arith.mulf %0, %0 : vector<22x256xf32>
    %cst = arith.constant dense<0.000000e+00> : vector<22xf32>
    %2 = vector.multi_reduction <add>, %1, %cst [1] : vector<22x256xf32> to vector<22xf32>
    %3 = vector.shape_cast %2 : vector<22xf32> to vector<22x1xf32>
    %cst_1 = arith.constant 1.000000e-24 : f32
    %4 = vector.broadcast %cst_1 : f32 to vector<22x1xf32>
    %5 = arith.maximumf %3, %4 : vector<22x1xf32>
    %6 = math.rsqrt %5 : vector<22x1xf32>
    %7 = vector.broadcast %6 : vector<22x1xf32> to vector<22x256xf32>
    %8 = arith.mulf %0, %7 : vector<22x256xf32>
    %c0_2 = arith.constant 0 : index
    %c0_3 = arith.constant 0 : index
    %9 = vector.load %arg3[%c0_2, %c0_3] : memref<16x1xi32, #tpu.memory_space<vmem>>, vector<16x1xi32>
    %10 = tpu.iota {dimensions = array<i32: 1>} : vector<16x22xi32>
    %11 = vector.broadcast %9 : vector<16x1xi32> to vector<16x22xi32>
    %12 = arith.cmpi eq, %11, %10 : vector<16x22xi32>
    %13 = arith.extui %12 : vector<16x22xi1> to vector<16x22xi32>
    %14 = arith.sitofp %13 : vector<16x22xi32> to vector<16x22xf32>
    %15 = tpu.iota {dimensions = array<i32: 0>} : vector<22x16xi32>
    %c0_4 = arith.constant 0 : index
    %c0_5 = arith.constant 0 : index
    %16 = vector.load %arg4[%c0_4, %c0_5] : memref<1x16xi32, #tpu.memory_space<vmem>>, vector<1x16xi32>
    %17 = vector.broadcast %16 : vector<1x16xi32> to vector<22x16xi32>
    %18 = arith.cmpi eq, %15, %17 : vector<22x16xi32>
    %19 = arith.extui %18 : vector<22x16xi1> to vector<22x16xi32>
    %20 = arith.sitofp %19 : vector<22x16xi32> to vector<22x16xf32>
    %cst_6 = arith.constant dense<0.000000e+00> : vector<16x256xf32>
    %21 = tpu.matmul %14, %8, %cst_6 {dimension_numbers = #tpu.dot_dimension_numbers<[1], [0], [0], [1], [0, 0, 1, 1], [], []>} : vector<16x22xf32>, vector<22x256xf32>, vector<16x256xf32> -> vector<16x256xf32>
    %c0_7 = arith.constant 0 : index
    %c0_8 = arith.constant 0 : index
    %22 = vector.load %arg2[%c0_7, %c0_8] : memref<16x256xf32, #tpu.memory_space<vmem>>, vector<16x256xf32>
    %23 = tpu.concatenate %21, %22 in 1 : vector<16x256xf32>, vector<16x256xf32> -> vector<16x512xf32>
    %24 = arith.truncf %23 : vector<16x512xf32> to vector<16x512xbf16>
    %c0_9 = arith.constant 0 : index
    %c0_10 = arith.constant 0 : index
    %25 = vector.load %arg5[%c0_9, %c0_10] : memref<512x256xbf16, #tpu.memory_space<vmem>>, vector<512x256xbf16>
    %cst_11 = arith.constant dense<0.000000e+00> : vector<16x256xf32>
    %26 = tpu.matmul %24, %25, %cst_11 {dimension_numbers = #tpu.dot_dimension_numbers<[1], [0], [0], [1], [0, 0, 1, 1], [], []>} : vector<16x512xbf16>, vector<512x256xbf16>, vector<16x256xf32> -> vector<16x256xf32>
    %c0_12 = arith.constant 0 : index
    %c0_13 = arith.constant 0 : index
    %27 = vector.load %arg6[%c0_12, %c0_13] : memref<1x256xf32, #tpu.memory_space<vmem>>, vector<1x256xf32>
    %28 = vector.broadcast %27 : vector<1x256xf32> to vector<16x256xf32>
    %29 = arith.addf %26, %28 : vector<16x256xf32>
    %c0_14 = arith.constant 0 : index
    %c0_15 = arith.constant 0 : index
    %30 = vector.load %arg8[%c0_14, %c0_15] : memref<16x256xf32, #tpu.memory_space<vmem>>, vector<16x256xf32>
    tpu.vector_store %arg8[%c0_14, %c0_15], %29 {strides = array<i32>} : memref<16x256xf32, #tpu.memory_space<vmem>>, vector<16x256xf32>,
    %cst_16 = arith.constant dense<0.000000e+00> : vector<22x256xf32>
    %31 = tpu.matmul %20, %29, %cst_16 {dimension_numbers = #tpu.dot_dimension_numbers<[1], [0], [0], [1], [0, 0, 1, 1], [], []>} : vector<22x16xf32>, vector<16x256xf32>, vector<22x256xf32> -> vector<22x256xf32>
    %cst_17 = arith.constant dense<0.000000e+00> : vector<22xf32>
    %32 = vector.multi_reduction <add>, %20, %cst_17 [1] : vector<22x16xf32> to vector<22xf32>
    %33 = vector.shape_cast %32 : vector<22xf32> to vector<22x1xf32>
    %cst_18 = arith.constant 0.000000e+00 : f32
    %34 = vector.broadcast %cst_18 : f32 to vector<22x1xf32>
    %35 = arith.cmpf ogt, %33, %34 : vector<22x1xf32>
    %36 = vector.shape_cast %35 : vector<22x1xi1> to vector<22x1xi1>
    %37 = vector.broadcast %36 : vector<22x1xi1> to vector<22x256xi1>
    %38 = arith.select %37, %31, %8 : vector<22x256xi1>, vector<22x256xf32>
    %c0_19 = arith.constant 0 : index
    %c0_20 = arith.constant 0 : index
    %39 = vector.load %arg7[%c0_19, %c0_20] : memref<22x256xf32, #tpu.memory_space<vmem>>, vector<22x256xf32>
    tpu.vector_store %arg7[%c0_19, %c0_20], %38 {strides = array<i32>} : memref<22x256xf32, #tpu.memory_space<vmem>>, vector<22x256xf32>,
    return
  }
  func.func @transform_0(%arg0: i32) -> (i32, i32) {
    %c0_i32 = arith.constant 0 : i32
    %c0_i32_0 = arith.constant 0 : i32
    %c0_i32_1 = arith.constant 0 : i32
    return %c0_i32, %c0_i32_0 : i32, i32
  }
  func.func @transform_1(%arg0: i32) -> (i32, i32) {
    %c0_i32 = arith.constant 0 : i32
    %c0_i32_0 = arith.constant 0 : i32
    %c0_i32_1 = arith.constant 0 : i32
    return %c0_i32, %c0_i32_0 : i32, i32
  }
  func.func @transform_2(%arg0: i32) -> (i32, i32) {
    %c0_i32 = arith.constant 0 : i32
    %c0_i32_0 = arith.constant 0 : i32
    %c0_i32_1 = arith.constant 0 : i32
    return %c0_i32, %c0_i32_0 : i32, i32
  }
  func.func @transform_3(%arg0: i32) -> (i32, i32) {
    %c0_i32 = arith.constant 0 : i32
    %c0_i32_0 = arith.constant 0 : i32
    %c0_i32_1 = arith.constant 0 : i32
    return %c0_i32, %c0_i32_0 : i32, i32
  }
  func.func @transform_4(%arg0: i32) -> (i32, i32) {
    %c0_i32 = arith.constant 0 : i32
    %c0_i32_0 = arith.constant 0 : i32
    %c0_i32_1 = arith.constant 0 : i32
    return %c0_i32, %c0_i32_0 : i32, i32
  }
  func.func @transform_5(%arg0: i32) -> (i32, i32) {
    %c0_i32 = arith.constant 0 : i32
    %c0_i32_0 = arith.constant 0 : i32
    %c0_i32_1 = arith.constant 0 : i32
    return %c0_i32, %c0_i32_0 : i32, i32
  }
  func.func @transform_6(%arg0: i32) -> (i32, i32) {
    %c0_i32 = arith.constant 0 : i32
    %c0_i32_0 = arith.constant 0 : i32
    %c0_i32_1 = arith.constant 0 : i32
    return %c0_i32, %c0_i32_0 : i32, i32
  }
  func.func @transform_7(%arg0: i32) -> (i32, i32) {
    %c0_i32 = arith.constant 0 : i32
    %c0_i32_0 = arith.constant 0 : i32
    %c0_i32_1 = arith.constant 0 : i32
    return %c0_i32, %c0_i32_0 : i32, i32
  }
}

</mosaic_0001>

<bundles_post_ra>
// kernel: tpu_custom_call.1
= control target key start
LH: loop header
LB: loop body
LE: loop exit
PB: predicated region body
PF: predicated region fallthrough
CT: control target
= control target key end

     0   :  { %13 = vsyncpa [#allocation3], 0  ;;  %s1561_s0 = inlined_call_operand.hbm [shape: f32[22,256], index: 0, kind: input, shape index: {}]   ;;  %s1562_s1 = inlined_call_operand.hbm [shape: f32[16,256], index: 1, kind: input, shape index: {}]   ;;  %s1563_s2 = inlined_call_operand.vmem [shape: s32[16,1], index: 2, kind: input, shape index: {}]   ;;  %s1564_s3 = inlined_call_operand.vmem [shape: s32[1,16], index: 3, kind: input, shape index: {}]   ;;  %s1565_s4 = inlined_call_operand.hbm [shape: bf16[512,256], index: 4, kind: input, shape index: {}]   ;;  %s1566_s5 = inlined_call_operand.vmem [shape: f32[1,256], index: 5, kind: input, shape index: {}]   ;;  %s1567_s6 = inlined_call_operand.hbm [shape: f32[22,256], index: 6, kind: output, shape index: {0}]   ;;  %s1568_s7 = inlined_call_operand.hbm [shape: f32[16,256], index: 7, kind: output, shape index: {1}]  }
   0x1   :  { %14 = vsyncpa [#allocation6], 0 }
   0x2   :  { %15 = vsyncpa [#allocation4], 0 }
   0x3   :  { %16 = vsyncpa [#allocation10], 0  ;;  %s34_s26 = sshll.u32 %s1562_s1, 4  ;;  %s1362_s27 = smov [#allocation5]   ;;  %s35_s26 = int_to_ptr.hbm [resolvable:$true] %s34_s26 }
   0x4   :  { %s36_s28 = sshll.u32 %s1362_s27, 4  ;;  %s21_s8 = sshll.u32 %s1561_s0, 4  ;;  %s37_s28 = int_to_ptr.vmem [resolvable:$true] %s36_s28  ;;  %s22_s8 = int_to_ptr.hbm [resolvable:$true] %s21_s8 }
   0x5   :  { %s1363_s9 = smov 256   ;;  %s1364_s10 = smov 16  }
   0x6   :  { %42 = dma.hbm_to_vmem [thread:$0]  %s35_s26, 512, %s37_s28, [#allocation6], %s1363_s9, %s1363_s9, %s1364_s10  }
   0x7   :  { %s1365_s11 = smov [#allocation2]   ;;  %s51_s1 = sshll.u32 %s1565_s4, 4  ;;  %s52_s1 = int_to_ptr.hbm [resolvable:$true] %s51_s1 }
   0x8   :  { %s23_s12 = sshll.u32 %s1365_s11, 4  ;;  %s1366_s0 = smov [#allocation7]   ;;  %s24_s12 = int_to_ptr.vmem [resolvable:$true] %s23_s12 }
   0x9   :  { %29 = dma.hbm_to_vmem [thread:$0]  %s22_s8, 768, %s24_s12, [#allocation3], %s1363_s9, %s1363_s9, %s1364_s10  }
   0xa   :  { %s53_s15 = sshll.u32 %s1366_s0, 4  ;;  %s1367_s16 = smov 128   ;;  %s54_s15 = int_to_ptr.vmem [resolvable:$true] %s53_s15 }
   0xb   :  { %s1368_s17 = smov 8  }
   0xc   :  { %59 = dma.hbm_to_vmem [thread:$0]  %s52_s1, 8192, %s54_s15, [#allocation6], %s1367_s16, %s1367_s16, %s1368_s17  }
   0xd   :  { %1354 = dma.done.wait [#allocation3], 768  }
   0xe   :  { %1355 = vsyncadd [#allocation3], 4294966528 }
   0xf   :  { %1356 = dma.done.wait [#allocation6], 8704  }
  0x10   :  { %1357 = vsyncadd [#allocation6], 4294958592  ;;  %v1369_v0 = vmov 0   ;;  %v1428_v1 = vld [vmem:[#allocation2] sm:$0xff]  ;;  %v1430_v2 = vld [vmem:[#allocation2 + $0x8] sm:$0xff]  ;;  %vm92_vm0 = vcmask 1045504   ;;  %v139_v62 = vlaneseq }
  0x11   :  { %1224 = vset.pattern.permute.xlu1 %v1369_v0  ;;  %1225 = vset.pattern.permute.xlu2 %v1369_v0  ;;  %v1432_v3 = vld [vmem:[#allocation2 + $0x20] sm:$0x3f]  ;;  %v80_v4 = vmul.f32 %v1428_v1, %v1428_v1  ;;  %v81_v5 = vmul.f32 %v1430_v2, %v1430_v2  ;;  %v1438_v6 = vld [vmem:[#allocation2 + $0x28] sm:$0x3f]  ;;  %v1449_v13 = vld [vmem:[#allocation2 + $0x10] sm:$0xff]  ;;  %vm168_vm11 = vcmask 179200  }
  0x12   :  { %1226 = vset.pattern.permute.xlu0 %v1369_v0  ;;  %v84_v7 = vmul.f32 %v1432_v3, %v1432_v3  ;;  %v85_v8 = vmul.f32 %v1438_v6, %v1438_v6  ;;  %v138_v9 = vld [vmem:[%s1563_s2 + $0x8] sm:$0xff]  ;;  %v1451_v14 = vld [vmem:[#allocation2 + $0x18] sm:$0xff]  ;;  %v82_v16 = vmul.f32 %v1449_v13, %v1449_v13  ;;  %v137_v19 = vld [vmem:[%s1563_s2] sm:$0xff]  ;;  %vm741_vm14 = vcmask 130048   ;;  %s853_s26 = sshll.u32 %s1568_s7, 4  ;;  %s1372_s7 = smov [#allocation8]   ;;  %s854_s26 = int_to_ptr.hbm [resolvable:$true] %s853_s26 }
  0x13   :  { %v86_v10 = vadd.f32 %v81_v5, %v80_v4  ;;  %145 = vperm.xlu2 %1225, %v138_v9   ;;  %v83_v17 = vmul.f32 %v1451_v14, %v1451_v14  ;;  %v941_v30 = vld [vmem:[#allocation7 + $0x70] sm:$0xf]  ;;  %v1160_v31 = vld [vmem:[#allocation7 + $0x74] sm:$0xf0]  ;;  %v933_v38 = vld [vmem:[#allocation7 + $0x60] sm:$0xf] }
  0x14   :  { %v93_v11 = vsel %vm92_vm0, %v84_v7, 0.0  ;;  %v94_v12 = vsel %vm92_vm0, %v85_v8, 0.0  ;;  %v1005_v32 = vld [vmem:[#allocation7 + $0xf0] sm:$0xf]  ;;  %v942_v33 = vor.u32 %v1160_v31, %v941_v30  ;;  %v1176_v34 = vld [vmem:[#allocation7 + $0xf4] sm:$0xf0] }
  0x15   :  { %87 = vadd.xlane.f32.xlu1 %v86_v10  ;;  %v95_v15 = vadd.f32 %v94_v12, %v93_v11  ;;  %v89_v18 = vadd.f32 %v83_v17, %v82_v16  ;;  %v1006_v37 = vor.u32 %v1176_v34, %v1005_v32  ;;  %v1158_v39 = vld [vmem:[#allocation7 + $0x64] sm:$0xf0]  ;;  %v997_v40 = vld [vmem:[#allocation7 + $0xe0] sm:$0xf]  ;;  %v925_v45 = vld [vmem:[#allocation7 + $0x50] sm:$0xf] }
  0x16   :  { %625 = vmatpush.bf16.msra.mxu2 %v942_v33  ;;  %v1174_v41 = vld [vmem:[#allocation7 + $0xe4] sm:$0xf0]  ;;  %v934_v43 = vor.u32 %v1158_v39, %v933_v38  ;;  %v1156_v48 = vld [vmem:[#allocation7 + $0x54] sm:$0xf0]  ;;  %v989_v49 = vld [vmem:[#allocation7 + $0xd0] sm:$0xf] }
  0x17   :  { %96 = vadd.xlane.f32.xlu0 %v95_v15  ;;  %639 = vmatpush.bf16.msra.mxu3 %v1006_v37  ;;  %v998_v44 = vor.u32 %v1174_v41, %v997_v40  ;;  %v926_v51 = vor.u32 %v1156_v48, %v925_v45  ;;  %v1172_v52 = vld [vmem:[#allocation7 + $0xd4] sm:$0xf0]  ;;  %v917_v55 = vld [vmem:[#allocation7 + $0x40] sm:$0xf]  ;;  %v1154_v57 = vld [vmem:[#allocation7 + $0x44] sm:$0xf0] }
  0x18   :  { %v990_v56 = vor.u32 %v1172_v52, %v989_v49  ;;  %v981_v58 = vld [vmem:[#allocation7 + $0xc0] sm:$0xf]  ;;  %v1170_v63 = vld [vmem:[#allocation7 + $0xc4] sm:$0xf0]  ;;  %v918_v5 = vor.u32 %v1154_v57, %v917_v55  ;;  %v909_v9 = vld [vmem:[#allocation7 + $0x30] sm:$0xf] }
  0x19   :  { %v982_v8 = vor.u32 %v1170_v63, %v981_v58  ;;  %v1152_v10 = vld [vmem:[#allocation7 + $0x34] sm:$0xf0]  ;;  %v1485_v12 = vand.u32 127, %v139_v62  ;;  %v965_v31 = vld [vmem:[#allocation7 + $0xa0] sm:$0xf]  ;;  %s838_s27 = sshll.u32 %s1372_s7, 4  ;;  %s839_s27 = int_to_ptr.vmem [resolvable:$true] %s838_s27 }
  0x1a   :  { %626 = vmatpush.bf16.msra.mxu2 %v934_v43  ;;  %v910_v17 = vor.u32 %v1152_v10, %v909_v9  ;;  %v1166_v32 = vld [vmem:[#allocation7 + $0xa4] sm:$0xf0]  ;;  %v1125_v38 = vld [vmem:[#allocation7 + $0x1e0] sm:$0xf]  ;;  %v957_v45 = vld [vmem:[#allocation7 + $0x90] sm:$0xf] }
  0x1b   :  { %640 = vmatpush.bf16.msra.mxu3 %v998_v44  ;;  %v1190_v37 = vld [vmem:[#allocation7 + $0x164] sm:$0xf0]  ;;  %v966_v41 = vor.u32 %v1166_v32, %v965_v31  ;;  %v1148_v44 = vld [vmem:[#allocation7 + $0x14] sm:$0xf0]  ;;  %v1117_v49 = vld [vmem:[#allocation7 + $0x1d0] sm:$0xf] }
  0x1c   :  { %v1206_v39 = vld [vmem:[#allocation7 + $0x1e4] sm:$0xf0]  ;;  %v1188_v48 = vld [vmem:[#allocation7 + $0x154] sm:$0xf0]  ;;  %v949_v55 = vld [vmem:[#allocation7 + $0x80] sm:$0xf] }
  0x1d   :  { %v1159_v57 = vld [vmem:[#allocation7 + $0x74] sm:$0xf]  ;;  %v943_v58 = vld [vmem:[#allocation7 + $0x78] sm:$0xf0]  ;;  %v1109_v9 = vld [vmem:[#allocation7 + $0x1c0] sm:$0xf] }
  0x1e   :  { %627 = vmatpush.bf16.msra.mxu2 %v926_v51  ;;  %v1202_v10 = vld [vmem:[#allocation7 + $0x1c4] sm:$0xf0]  ;;  %v1021_v32 = vld [vmem:[#allocation7 + $0x110] sm:$0xf]  ;;  %s840_s30 = sshll.u32 %s1567_s6, 4  ;;  %s841_s30 = int_to_ptr.hbm [resolvable:$true] %s840_s30 }
  0x1f   :  { %90 = vadd.xlane.f32.xlu0 %v89_v18  ;;  %641 = vmatpush.bf16.msra.mxu3 %v990_v56  ;;  %v1162_v56 = vld [vmem:[#allocation7 + $0x84] sm:$0xf0] }
  0x22   :  { %628 = vmatpush.bf16.msra.mxu2 %v918_v5 }
  0x23   :  { %642 = vmatpush.bf16.msra.mxu3 %v982_v8  ;;  %v1186_v8 = vld [vmem:[#allocation7 + $0x144] sm:$0xf0] }
  0x26   :  { %629 = vmatpush.bf16.msra.mxu2 %v910_v17  ;;  %v1037_v17 = vld [vmem:[#allocation7 + $0x130] sm:$0xf] }
  0x2e   :  { %142 = vperm.xlu1 %1224, %v137_v19  }
  0x6d   :  { %v146_v43 = vpop.permute.xlu2 %145 }
  0x6e   :  { %vm148_vm12 = vcmp.eq.s32.totalorder %v146_v43, %v1485_v12  ;;  %v1071_v43 = vld [vmem:[#allocation7 + $0x178] sm:$0xf0] }
  0x88   :  { %v88_v20 = vpop.xlane.xlu1 %87 }
  0x89   :  { %v1460_v21 = vmax.f32 %v88_v20, 1e-24  ;;  %v1069_v20 = vld [vmem:[#allocation7 + $0x170] sm:$0xf] }
  0x8a   :  { %v97_v22 = vpop.xlane.xlu0 %96 }
  0x8b   :  { %1228 = vrsqrt.f32 %v1460_v21  ;;  %v100_v23 = vmax.f32 %v97_v22, 1e-24  ;;  %vm107_vm4 = vweird.f32 %v1460_v21  ;;  %v1192_v22 = vld [vmem:[#allocation7 + $0x174] sm:$0xf0] }
  0x8c   :  { %v1070_v33 = vor.u32 %v1192_v22, %v1069_v20  ;;  %v1200_v20 = vld [vmem:[#allocation7 + $0x1b4] sm:$0xf0] }
  0x8d   :  { %1230 = vrsqrt.f32 %v100_v23  ;;  %vm127_vm2 = vweird.f32 %v100_v23 }
  0x91   :  { %v1463_v24 = vpop.eup %1228 }
  0x92   :  { %v102_v25 = vmul.f32 %v1463_v24, %v1460_v21  ;;  %v91_v26 = vpop.xlane.xlu0 %90  ;;  %vm108_vm5 = vweird.f32 %v1463_v24  ;;  %v1150_v21 = vld [vmem:[#allocation7 + $0x24] sm:$0xf0] }
  0x93   :  { %v1231_v27 = vpop.eup %1230  ;;  %v1467_v28 = vmax.f32 %v91_v26, 1e-24  ;;  %vm109_vm8 = vmor %vm107_vm4, %vm108_vm5  ;;  %v1133_v26 = vld [vmem:[#allocation7 + $0x1f0] sm:$0xf] }
  0x94   :  { %v122_v29 = vmul.f32 %v1231_v27, %v100_v23  ;;  %v103_v35 = vmul.f32 %v1463_v24, %v102_v25  ;;  %vm128_vm1 = vweird.f32 %v1231_v27 }
  0x95   :  { %1232 = vrsqrt.f32 %v1467_v28  ;;  %vm129_vm3 = vmor %vm127_vm2, %vm128_vm1  ;;  %vm117_vm7 = vweird.f32 %v1467_v28  ;;  %vm809_vm1 = vcmask 128000  }
  0x96   :  { %v123_v36 = vmul.f32 %v1231_v27, %v122_v29  ;;  %v104_v46 = vmul.f32 0.5, %v103_v35  ;;  %v901_v29 = vld [vmem:[#allocation7 + $0x20] sm:$0xf] }
  0x97   :  { %v902_v40 = vor.u32 %v1150_v21, %v901_v29  ;;  %v1198_v29 = vld [vmem:[#allocation7 + $0x1a4] sm:$0xf0] }
  0x98   :  { %v124_v42 = vmul.f32 0.5, %v123_v36  ;;  %v105_v59 = vsub.f32 1.5, %v104_v46  ;;  %v1061_v36 = vld [vmem:[#allocation7 + $0x160] sm:$0xf]  ;;  %v1126_v46 = vor.u32 %v1206_v39, %v1125_v38  ;;  %v1178_v39 = vld [vmem:[#allocation7 + $0x104] sm:$0xf0] }
  0x99   :  { %630 = vmatpush.bf16.msra.mxu2 %v902_v40  ;;  %v1013_v38 = vld [vmem:[#allocation7 + $0x100] sm:$0xf] }
  0x9a   :  { %v125_v47 = vsub.f32 1.5, %v124_v42  ;;  %v106_v15 = vmul.f32 %v1463_v24, %v105_v59  ;;  %v893_v42 = vld [vmem:[#allocation7 + $0x10] sm:$0xf]  ;;  %v1175_v59 = vld [vmem:[#allocation7 + $0xf4] sm:$0xf] }
  0x9b   :  { %v1233_v50 = vpop.eup %1232  ;;  %v894_v51 = vor.u32 %v1148_v44, %v893_v42  ;;  %v1077_v40 = vld [vmem:[#allocation7 + $0x180] sm:$0xf]  ;;  %v1191_v42 = vld [vmem:[#allocation7 + $0x174] sm:$0xf]  ;;  %v1014_v44 = vor.u32 %v1178_v39, %v1013_v38 }
  0x9c   :  { %v112_v53 = vmul.f32 %v1233_v50, %v1467_v28  ;;  %v126_v54 = vmul.f32 %v1231_v27, %v125_v47  ;;  %vm118_vm6 = vweird.f32 %v1233_v50  ;;  %v110_v25 = vsel %vm109_vm8, %v1463_v24, %v106_v15  ;;  %v1053_v47 = vld [vmem:[#allocation7 + $0x150] sm:$0xf]  ;;  %v1183_v38 = vld [vmem:[#allocation7 + $0x134] sm:$0xf] }
  0x9d   :  { %vm119_vm9 = vmor %vm117_vm7, %vm118_vm6  ;;  %v1370_v24 = vmov 0.0   ;;  %v1505_v34 = vmul.f32 %v110_v25, %v1428_v1  ;;  %v1164_v1 = vld [vmem:[#allocation7 + $0x94] sm:$0xf0]  ;;  %v1054_v63 = vor.u32 %v1188_v48, %v1053_v47  ;;  %631 = vmatpush.bf16.msra.mxu2 %v894_v51  ;;  %v1173_v47 = vld [vmem:[#allocation7 + $0xe4] sm:$0xf] }
  0x9e   :  { %v113_v60 = vmul.f32 %v1233_v50, %v112_v53  ;;  %v130_v61 = vsel %vm129_vm3, %v1231_v27, %v126_v54  ;;  %v1208_v27 = vld [vmem:[#allocation7 + $0x1f4] sm:$0xf0]  ;;  %v958_v52 = vor.u32 %v1164_v1, %v957_v45  ;;  %v885_v53 = vld [vmem:[#allocation7] sm:$0xf]  ;;  %v1146_v54 = vld [vmem:[#allocation7 + $0x4] sm:$0xf0]  ;;  %v1074_v1 = vor.u32 %v1191_v42, %v1071_v43 }
  0x9f   :  { %v1473_v0 = vmul.f32 %v130_v61, %v1432_v3  ;;  %v1476_v4 = vmul.f32 %v130_v61, %v1438_v6  ;;  %v973_v3 = vld [vmem:[#allocation7 + $0xb0] sm:$0xf]  ;;  %v1168_v6 = vld [vmem:[#allocation7 + $0xb4] sm:$0xf0]  ;;  %v1134_v35 = vor.u32 %v1208_v27, %v1133_v26  ;;  %v873_v61 = vsel %vm148_vm12, 1.0, %v1370_v24 }
  0xa0   :  { %v114_v7 = vmul.f32 0.5, %v113_v60  ;;  %v143_v16 = vpop.permute.xlu1 %142  ;;  %v974_v19 = vor.u32 %v1168_v6, %v973_v3  ;;  %v1007_v60 = vld [vmem:[#allocation7 + $0xf8] sm:$0xf0]  ;;  %v886_v3 = vor.u32 %v1146_v54, %v885_v53  ;;  %v950_v6 = vor.u32 %v1162_v56, %v949_v55  ;;  %v1182_v26 = vld [vmem:[#allocation7 + $0x124] sm:$0xf0] }
  0xa1   :  { %877 = vmatpush.msk.msra.mxu0 %vm92_vm0, %v1473_v0  ;;  %880 = vmatpush.msk.msra.mxu1 %vm92_vm0, %v1476_v4  ;;  %vm147_vm10 = vcmp.eq.s32.totalorder %v143_v16, %v1485_v12  ;;  %v1010_v12 = vor.u32 %v1175_v59, %v1007_v60  ;;  %v1110_v16 = vor.u32 %v1202_v10, %v1109_v9  ;;  %v1093_v27 = vld [vmem:[#allocation7 + $0x1a0] sm:$0xf]  ;;  %v1135_v51 = vld [vmem:[#allocation7 + $0x1f8] sm:$0xf0]  ;;  %v1189_v54 = vld [vmem:[#allocation7 + $0x164] sm:$0xf] }
  0xa2   :  { %v115_v11 = vsub.f32 1.5, %v114_v7  ;;  %643 = vmatpush.bf16.msra.mxu3 %v974_v19  ;;  %v1045_v7 = vld [vmem:[#allocation7 + $0x140] sm:$0xf]  ;;  %v1101_v19 = vld [vmem:[#allocation7 + $0x1b0] sm:$0xf]  ;;  %632 = vmatpush.bf16.msra.mxu2 %v886_v3  ;;  %v1094_v31 = vor.u32 %v1198_v29, %v1093_v27  ;;  %v230_v42 = vld [vmem:[#allocation5 + $0x18] sm:$0xff] }
  0xa3   :  { %v1046_v15 = vor.u32 %v1186_v8, %v1045_v7  ;;  %v1063_v55 = vld [vmem:[#allocation7 + $0x168] sm:$0xf0]  ;;  %v1171_v59 = vld [vmem:[#allocation7 + $0xd4] sm:$0xf]  ;;  %v1055_v10 = vld [vmem:[#allocation7 + $0x158] sm:$0xf0] }
  0xa4   :  { %v116_v18 = vmul.f32 %v1233_v50, %v115_v11  ;;  %v946_v11 = vor.u32 %v1159_v57, %v943_v58  ;;  %v1066_v56 = vor.u32 %v1189_v54, %v1063_v55  ;;  %v1155_v57 = vld [vmem:[#allocation7 + $0x54] sm:$0xf]  ;;  %v927_v58 = vld [vmem:[#allocation7 + $0x58] sm:$0xf0] }
  0xa5   :  { %v930_v60 = vor.u32 %v1155_v57, %v927_v58  ;;  %v1187_v9 = vld [vmem:[#allocation7 + $0x154] sm:$0xf]  ;;  %v911_v27 = vld [vmem:[#allocation7 + $0x38] sm:$0xf0] }
  0xa6   :  { %v120_v23 = vsel %vm119_vm9, %v1233_v50, %v116_v18  ;;  %v1204_v50 = vld [vmem:[#allocation7 + $0x1d4] sm:$0xf0]  ;;  %644 = vmatpush.bf16.msra.mxu3 %v966_v41  ;;  %681 = vmatpush.bf16.msrb.mxu2 %v946_v11  ;;  %v1194_v41 = vld [vmem:[#allocation7 + $0x184] sm:$0xf0]  ;;  %v1058_v3 = vor.u32 %v1187_v9, %v1055_v10  ;;  %v919_v11 = vld [vmem:[#allocation7 + $0x48] sm:$0xf0] }
  0xa7   :  { %v1494_v30 = vmul.f32 %v120_v23, %v1449_v13  ;;  %v1497_v28 = vmul.f32 %v120_v23, %v1451_v14  ;;  %v872_v13 = vsel %vm147_vm10, 1.0, %v1370_v24  ;;  %v1508_v14 = vmul.f32 %v110_v25, %v1430_v2  ;;  %v1184_v18 = vld [vmem:[#allocation7 + $0x134] sm:$0xf0]  ;;  %v1029_v25 = vld [vmem:[#allocation7 + $0x120] sm:$0xf] }
  0xa8   :  { %v1062_v2 = vor.u32 %v1190_v37, %v1061_v36  ;;  %v1118_v5 = vor.u32 %v1204_v50, %v1117_v49  ;;  %v1038_v22 = vor.u32 %v1184_v18, %v1037_v17  ;;  %v1102_v23 = vor.u32 %v1200_v20, %v1101_v19  ;;  %v999_v49 = vld [vmem:[#allocation7 + $0xe8] sm:$0xf0]  ;;  %v1207_v50 = vld [vmem:[#allocation7 + $0x1f4] sm:$0xf]  ;;  %v1119_v18 = vld [vmem:[#allocation7 + $0x1d8] sm:$0xf0] }
  0xa9   :  { %195 = vmatpush.msra.mxu0 %v1494_v30  ;;  %218 = vmatpush.msra.mxu1 %v1497_v28  ;;  %v1030_v21 = vor.u32 %v1182_v26, %v1029_v25  ;;  %v1078_v45 = vor.u32 %v1194_v41, %v1077_v40  ;;  %v1138_v53 = vor.u32 %v1207_v50, %v1135_v51  ;;  %v1203_v17 = vld [vmem:[#allocation7 + $0x1d4] sm:$0xf]  ;;  %v1039_v40 = vld [vmem:[#allocation7 + $0x138] sm:$0xf0]  ;;  %v228_v41 = vld [vmem:[#allocation5 + $0x8] sm:$0xff] }
  0xaa   :  { %645 = vmatpush.bf16.msra.mxu3 %v958_v52  ;;  %v1002_v52 = vor.u32 %v1173_v47, %v999_v49  ;;  %v1122_v20 = vor.u32 %v1203_v17, %v1119_v18  ;;  %v1151_v26 = vld [vmem:[#allocation7 + $0x34] sm:$0xf]  ;;  %v1042_v43 = vor.u32 %v1183_v38, %v1039_v40  ;;  %v967_v47 = vld [vmem:[#allocation7 + $0xa8] sm:$0xf0]  ;;  %v1103_v49 = vld [vmem:[#allocation7 + $0x1b8] sm:$0xf0] }
  0xab   :  { %196 = vmatpush.msra.mxu0 %v1505_v34  ;;  %219 = vmatpush.msra.mxu1 %v1508_v14  ;;  %v1167_v29 = vld [vmem:[#allocation7 + $0xb4] sm:$0xf]  ;;  %v959_v58 = vld [vmem:[#allocation7 + $0x98] sm:$0xf0]  ;;  %v1145_v9 = vld [vmem:[#allocation7 + $0x4] sm:$0xf] }
  0xac   :  { %878 = vmatmul.msk.f32.vlgmr.msra.gmra.mxu0 %vm168_vm11, %v872_v13  ;;  %881 = vmatmul.msk.f32.vlgmr.msra.gmra.mxu1 %vm168_vm11, %v872_v13  ;;  %v1085_v13 = vld [vmem:[#allocation7 + $0x190] sm:$0xf]  ;;  %v1147_v54 = vld [vmem:[#allocation7 + $0x14] sm:$0xf]  ;;  %v887_v10 = vld [vmem:[#allocation7 + $0x8] sm:$0xf0] }
  0xad   :  { %653 = vmatpush.bf16.msrb.mxu0 %v1070_v33  ;;  %667 = vmatpush.bf16.msrb.mxu1 %v1134_v35  ;;  %v1180_v33 = vld [vmem:[#allocation7 + $0x114] sm:$0xf0]  ;;  %v1163_v57 = vld [vmem:[#allocation7 + $0x94] sm:$0xf]  ;;  %v1177_v17 = vld [vmem:[#allocation7 + $0x104] sm:$0xf] }
  0xae   :  { %646 = vmatpush.bf16.msra.mxu3 %v950_v6  ;;  %v1196_v35 = vld [vmem:[#allocation7 + $0x194] sm:$0xf0]  ;;  %v1022_v36 = vor.u32 %v1180_v33, %v1021_v32  ;;  %v1153_v6 = vld [vmem:[#allocation7 + $0x44] sm:$0xf]  ;;  %v1111_v33 = vld [vmem:[#allocation7 + $0x1c8] sm:$0xf0] }
  0xaf   :  { %v1086_v37 = vor.u32 %v1196_v35, %v1085_v13  ;;  %v1201_v32 = vld [vmem:[#allocation7 + $0x1c4] sm:$0xf]  ;;  %v1015_v18 = vld [vmem:[#allocation7 + $0x108] sm:$0xf0] }
  0xb0   :  { %v1114_v35 = vor.u32 %v1201_v32, %v1111_v33 }
  0xb1   :  { %654 = vmatpush.bf16.msrb.mxu0 %v1062_v2  ;;  %668 = vmatpush.bf16.msrb.mxu1 %v1126_v46  ;;  %v1157_v2 = vld [vmem:[#allocation7 + $0x64] sm:$0xf]  ;;  %v935_v46 = vld [vmem:[#allocation7 + $0x68] sm:$0xf0] }
  0xb2   :  { %695 = vmatpush.bf16.msrb.mxu3 %v1010_v12  ;;  %v938_v48 = vor.u32 %v1157_v2, %v935_v46  ;;  %v1169_v12 = vld [vmem:[#allocation7 + $0xc4] sm:$0xf] }
  0xb3   :  { %v1165_v2 = vld [vmem:[#allocation7 + $0xa4] sm:$0xf] }
  0xb4   :  { %879 = vmatmul.msk.f32.gmra.mxu0 %vm168_vm11, %v873_v61  ;;  %882 = vmatmul.msk.f32.gmra.mxu1 %vm168_vm11, %v873_v61  ;;  %v991_v61 = vld [vmem:[#allocation7 + $0xd8] sm:$0xf0]  ;;  %v970_v50 = vor.u32 %v1165_v2, %v967_v47 }
  0xb5   :  { %655 = vmatpush.bf16.msrb.mxu0 %v1054_v63  ;;  %669 = vmatpush.bf16.msrb.mxu1 %v1118_v5  ;;  %v1205_v63 = vld [vmem:[#allocation7 + $0x1e4] sm:$0xf]  ;;  %v1127_v5 = vld [vmem:[#allocation7 + $0x1e8] sm:$0xf0]  ;;  %v994_v7 = vor.u32 %v1171_v59, %v991_v61 }
  0xb6   :  { %682 = vmatpush.bf16.msrb.mxu2 %v938_v48  ;;  %696 = vmatpush.bf16.msrb.mxu3 %v1002_v52  ;;  %v1130_v8 = vor.u32 %v1205_v63, %v1127_v5  ;;  %v1199_v48 = vld [vmem:[#allocation7 + $0x1b4] sm:$0xf]  ;;  %v1181_v52 = vld [vmem:[#allocation7 + $0x124] sm:$0xf]  ;;  %v1095_v63 = vld [vmem:[#allocation7 + $0x1a8] sm:$0xf0] }
  0xb7   :  { %v1106_v51 = vor.u32 %v1199_v48, %v1103_v49  ;;  %v1197_v61 = vld [vmem:[#allocation7 + $0x1a4] sm:$0xf]  ;;  %v1179_v5 = vld [vmem:[#allocation7 + $0x114] sm:$0xf] }
  0xb9   :  { %656 = vmatpush.bf16.msrb.mxu0 %v1046_v15  ;;  %670 = vmatpush.bf16.msrb.mxu1 %v1110_v16  ;;  %v922_v15 = vor.u32 %v1153_v6, %v919_v11  ;;  %v983_v16 = vld [vmem:[#allocation7 + $0xc8] sm:$0xf0]  ;;  %v1161_v6 = vld [vmem:[#allocation7 + $0x84] sm:$0xf] }
  0xba   :  { %683 = vmatpush.bf16.msrb.mxu2 %v930_v60  ;;  %697 = vmatpush.bf16.msrb.mxu3 %v994_v7  ;;  %v986_v19 = vor.u32 %v1169_v12, %v983_v16  ;;  %v962_v60 = vor.u32 %v1163_v57, %v959_v58  ;;  %v1098_v7 = vor.u32 %v1197_v61, %v1095_v63  ;;  %v951_v11 = vld [vmem:[#allocation7 + $0x88] sm:$0xf0]  ;;  %v1195_v12 = vld [vmem:[#allocation7 + $0x194] sm:$0xf]  ;;  %v1087_v16 = vld [vmem:[#allocation7 + $0x198] sm:$0xf0] }
  0xbd   :  { %657 = vmatpush.bf16.msrb.mxu0 %v1038_v22  ;;  %671 = vmatpush.bf16.msrb.mxu1 %v1102_v23  ;;  %v1185_v22 = vld [vmem:[#allocation7 + $0x144] sm:$0xf]  ;;  %v1047_v23 = vld [vmem:[#allocation7 + $0x148] sm:$0xf0] }
  0xbe   :  { %684 = vmatpush.bf16.msrb.mxu2 %v922_v15  ;;  %v1050_v25 = vor.u32 %v1185_v22, %v1047_v23  ;;  %698 = vmatpush.bf16.msrb.mxu3 %v986_v19  ;;  %v890_v15 = vor.u32 %v1145_v9, %v887_v10  ;;  %v954_v19 = vor.u32 %v1161_v6, %v951_v11  ;;  %v1193_v23 = vld [vmem:[#allocation7 + $0x184] sm:$0xf] }
  0xbf   :  { %v1018_v22 = vor.u32 %v1177_v17, %v1015_v18 }
  0xc1   :  { %658 = vmatpush.bf16.msrb.mxu0 %v1030_v21  ;;  %672 = vmatpush.bf16.msrb.mxu1 %v1094_v31  ;;  %v914_v21 = vor.u32 %v1151_v26, %v911_v27  ;;  %v975_v31 = vld [vmem:[#allocation7 + $0xb8] sm:$0xf0] }
  0xc2   :  { %v978_v13 = vor.u32 %v1167_v29, %v975_v31 }
  0xc3   :  { %685 = vmatpush.bf16.msrb.mxu2 %v914_v21 }
  0xc4   :  { %699 = vmatpush.bf16.msrb.mxu3 %v978_v13  ;;  %v1227_v13 = vld [vmem:[%s1564_s3] ss:$0 sm:$0xff]  ;;  %s1371_s3 = smov [#allocation9]  }
  0xc5   :  { %659 = vmatpush.bf16.msrb.mxu0 %v1022_v36  ;;  %673 = vmatpush.bf16.msrb.mxu1 %v1086_v37  ;;  %v227_v36 = vld [vmem:[#allocation5] sm:$0xff]  ;;  %v229_v37 = vld [vmem:[#allocation5 + $0x10] sm:$0xff] }
  0xc6   :  { %v233_v39 = vpack.c.bf16 %v229_v37, %v227_v36  ;;  %v299_v37 = vld [vmem:[%s1566_s5] sm:$0x3]  ;;  %s851_s5 = sshll.u32 %s1371_s3, 4  ;;  %s852_s5 = int_to_ptr.vmem [resolvable:$true] %s851_s5 }
  0xc7   :  { %v302_v58 = vperm.slane %v299_v37, 1 }
  0xc8   :  { %700 = vmatpush.bf16.msrb.mxu3 %v970_v50 }
  0xc9   :  { %660 = vmatpush.bf16.msrb.mxu0 %v1014_v44  ;;  %674 = vmatpush.bf16.msrb.mxu1 %v1078_v45  ;;  %v234_v44 = vpack.c.bf16 %v230_v42, %v228_v41  ;;  %v1149_v45 = vld [vmem:[#allocation7 + $0x24] sm:$0xf]  ;;  %v301_v41 = vperm.slane %v299_v37, 0 }
  0xcc   :  { %661 = vmatmul.bf16.vlgmr.msrb.gmra.mxu0 %v233_v39  ;;  %675 = vmatmul.bf16.vlgmr.msrb.gmra.mxu1 %v234_v44 }
  0xcd   :  { %709 = vmatpush.bf16.msra.mxu0 %v1074_v1  ;;  %723 = vmatpush.bf16.msra.mxu1 %v1138_v53  ;;  %v903_v1 = vld [vmem:[#allocation7 + $0x28] sm:$0xf0] }
  0xce   :  { %v906_v46 = vor.u32 %v1149_v45, %v903_v1  ;;  %v1031_v53 = vld [vmem:[#allocation7 + $0x128] sm:$0xf0]  ;;  %701 = vmatpush.bf16.msrb.mxu3 %v962_v60 }
  0xcf   :  { %v1034_v55 = vor.u32 %v1181_v52, %v1031_v53 }
  0xd0   :  { %686 = vmatpush.bf16.msrb.mxu2 %v906_v46 }
  0xd1   :  { %710 = vmatpush.bf16.msra.mxu0 %v1066_v56  ;;  %724 = vmatpush.bf16.msra.mxu1 %v1130_v8  ;;  %v895_v56 = vld [vmem:[#allocation7 + $0x18] sm:$0xf0] }
  0xd2   :  { %v898_v59 = vor.u32 %v1147_v54, %v895_v56  ;;  %v1023_v8 = vld [vmem:[#allocation7 + $0x118] sm:$0xf0]  ;;  %702 = vmatpush.bf16.msrb.mxu3 %v954_v19 }
  0xd4   :  { %687 = vmatpush.bf16.msrb.mxu2 %v898_v59 }
  0xd5   :  { %711 = vmatpush.bf16.msra.mxu0 %v1058_v3  ;;  %725 = vmatpush.bf16.msra.mxu1 %v1122_v20  ;;  %v1026_v3 = vor.u32 %v1179_v5, %v1023_v8  ;;  %v1090_v20 = vor.u32 %v1195_v12, %v1087_v16 }
  0xd8   :  { %688 = vmatpush.bf16.msrb.mxu2 %v890_v15 }
  0xd9   :  { %712 = vmatpush.bf16.msra.mxu0 %v1050_v25  ;;  %726 = vmatpush.bf16.msra.mxu1 %v1114_v35  ;;  %v1079_v25 = vld [vmem:[#allocation7 + $0x188] sm:$0xf0]  ;;  %v154_v35 = vshrl.u32 %v139_v62, 7 }
  0xda   :  { %v1082_v26 = vor.u32 %v1193_v23, %v1079_v25 }
  0xdb   :  { %vm159_vm13 = vcmp.eq.s32.totalorder %v154_v35, %v1227_v13  ;;  %v155_v36 = vadd.s32 8, %v154_v35 }
  0xdc   :  { %v1526_v38 = vsel %vm159_vm13, 1.0, %v1370_v24 }
  0xdd   :  { %713 = vmatpush.bf16.msra.mxu0 %v1042_v43  ;;  %727 = vmatpush.bf16.msra.mxu1 %v1106_v51  ;;  %vm160_vm15 = vcmp.eq.s32.totalorder %v155_v36, %v1227_v13  ;;  %v156_v43 = vadd.s32 16, %v154_v35 }
  0xde   :  { %v875_v45 = vsel %vm160_vm15, 1.0, %v1370_v24 }
  0xdf   :  { %v806_v2 = vsel %vm741_vm14, %v875_v45, 0.0  ;;  %vm161_vm0 = vcmp.eq.s32.totalorder %v156_v43, %v1227_v13 }
  0xe0   :  { %807 = vadd.xlane.f32.xlu0 %v806_v2  ;;  %v876_v48 = vsel %vm161_vm0, 1.0, %v1370_v24 }
  0xe1   :  { %714 = vmatpush.bf16.msra.mxu0 %v1034_v55  ;;  %728 = vmatpush.bf16.msra.mxu1 %v1098_v7  ;;  %v810_v51 = vsel %vm809_vm1, %v876_v48, 0.0 }
  0xe5   :  { %715 = vmatpush.bf16.msra.mxu0 %v1026_v3  ;;  %729 = vmatpush.bf16.msra.mxu1 %v1090_v20 }
  0xe8   :  { %811 = vadd.xlane.f32.xlu0 %v810_v51 }
  0xe9   :  { %716 = vmatpush.bf16.msra.mxu0 %v1018_v22  ;;  %730 = vmatpush.bf16.msra.mxu1 %v1082_v26 }
  0xec   :  { %717 = vmatmul.bf16.vlgmr.msra.gmra.mxu0 %v233_v39  ;;  %731 = vmatmul.bf16.vlgmr.msra.gmra.mxu1 %v234_v44  ;;  %v803_v39 = vsel %vm741_vm14, %v1526_v38, 0.0 }
  0xed   :  { %804 = vadd.xlane.f32.xlu2 %v803_v39 }
 0x129   :  { %v198_v27 = vpop.f32.mrf.mxu0  ;;  %v221_v29 = vpop.f32.mrf.mxu1 }
 0x131   :  { %v201_v21 = vpop.f32.mrf.mxu0  ;;  %v224_v31 = vpop.f32.mrf.mxu1 }
 0x132   :  { %v231_v32 = vpack.c.bf16 %v201_v21, %v198_v27  ;;  %v232_v33 = vpack.c.bf16 %v224_v31, %v221_v29 }
 0x134   :  { %633 = vmatmul.bf16.vlgmr.msra.gmra.mxu2 %v231_v32  ;;  %647 = vmatmul.bf16.vlgmr.msra.gmra.mxu3 %v232_v33 }
 0x144   :  { %689 = vmatmul.bf16.vlgmr.msrb.gmra.mxu2 %v231_v32  ;;  %703 = vmatmul.bf16.vlgmr.msrb.gmra.mxu3 %v232_v33 }
 0x149   :  { %v662_v40 = vpop.f32.mrf.mxu0  ;;  %v676_v42 = vpop.f32.mrf.mxu1 }
 0x151   :  { %v664_v49 = vpop.f32.mrf.mxu0  ;;  %v678_v55 = vpop.f32.mrf.mxu1 }
 0x153   :  { %v808_v19 = vpop.xlane.xlu0 %807 }
 0x154   :  { %vm814_vm3 = vcmp.gt.f32.partialorder %v808_v19, 0.0 }
 0x15b   :  { %v812_v26 = vpop.xlane.xlu0 %811 }
 0x15c   :  { %vm815_vm4 = vcmp.gt.f32.partialorder %v812_v26, 0.0 }
 0x160   :  { %v805_v18 = vpop.xlane.xlu2 %804 }
 0x161   :  { %vm813_vm2 = vcmp.gt.f32.partialorder %v805_v18, 0.0 }
 0x169   :  { %v718_v24 = vpop.f32.mrf.mxu0  ;;  %v732_v7 = vpop.f32.mrf.mxu1 }
 0x171   :  { %v720_v12 = vpop.f32.mrf.mxu0  ;;  %v734_v16 = vpop.f32.mrf.mxu1 }
 0x1b7   :  { %v634_v62 = vpop.f32.mrf.mxu2  ;;  %v648_v44 = vpop.f32.mrf.mxu3 }
 0x1b8   :  { %v635_v1 = vadd.f32 %v634_v62, %v301_v41 }
 0x1ba   :  { %v649_v46 = vadd.f32 %v648_v44, %v635_v1 }
 0x1bc   :  { %v663_v47 = vadd.f32 %v662_v40, %v649_v46 }
 0x1be   :  { %v677_v50 = vadd.f32 %v676_v42, %v663_v47 }
 0x1bf   :  { %v636_v52 = vpop.f32.mrf.mxu2  ;;  %v650_v53 = vpop.f32.mrf.mxu3 }
 0x1c0   :  { %v637_v54 = vadd.f32 %v636_v52, %v301_v41  ;;  %737 = vst [vmem:[#allocation9] sm:$0xff] %v677_v50 }
 0x1c2   :  { %v651_v56 = vadd.f32 %v650_v53, %v637_v54 }
 0x1c4   :  { %v665_v57 = vadd.f32 %v664_v49, %v651_v56 }
 0x1c6   :  { %v679_v59 = vadd.f32 %v678_v55, %v665_v57 }
 0x1c7   :  { %v690_v60 = vpop.f32.mrf.mxu2  ;;  %v704_v61 = vpop.f32.mrf.mxu3 }
 0x1c8   :  { %739 = vst [vmem:[#allocation9 + $0x10] sm:$0xff] %v679_v59  ;;  %v691_v63 = vadd.f32 %v690_v60, %v302_v58  ;;  %765 = vmatpush.msrb.mxu0 %v679_v59  ;;  %1209 = vmatpush.msra.mxu2 %v679_v59 }
 0x1ca   :  { %v705_v5 = vadd.f32 %v704_v61, %v691_v63  ;;  %766 = vmatpush.msrb.mxu0 %v677_v50  ;;  %1210 = vmatpush.msra.mxu2 %v677_v50 }
 0x1cb   :  { %1139 = vmatmul.msk.f32.vlgmr.msrb.gmra.mxu0 %vm741_vm14, %v1526_v38  ;;  %1140 = vmatmul.msk.f32.vlgmr.msra.gmra.mxu2 %vm741_vm14, %v875_v45 }
 0x1cc   :  { %v719_v8 = vadd.f32 %v718_v24, %v705_v5 }
 0x1ce   :  { %v733_v9 = vadd.f32 %v732_v7, %v719_v8 }
 0x1cf   :  { %v692_v10 = vpop.f32.mrf.mxu2  ;;  %v706_v6 = vpop.f32.mrf.mxu3 }
 0x1d0   :  { %v693_v3 = vadd.f32 %v692_v10, %v302_v58  ;;  %738 = vst [vmem:[#allocation9 + $0x8] sm:$0xff] %v733_v9 }
 0x1d2   :  { %v707_v11 = vadd.f32 %v706_v6, %v693_v3 }
 0x1d3   :  { %1141 = vmatmul.msk.f32.gmra.mxu2 %vm741_vm14, %v876_v48 }
 0x1d4   :  { %v721_v15 = vadd.f32 %v720_v12, %v707_v11 }
 0x1d6   :  { %v735_v17 = vadd.f32 %v734_v16, %v721_v15 }
 0x1d8   :  { %740 = vst [vmem:[#allocation9 + $0x18] sm:$0xff] %v735_v17  ;;  %791 = vmatpush.msrb.mxu1 %v735_v17  ;;  %1211 = vmatpush.msra.mxu3 %v735_v17 }
 0x1d9   :  { %859 = dma.vmem_to_hbm [thread:$0]  %s852_s5, 512, %s854_s26, [#allocation10], %s1363_s9, %s1363_s9, %s1364_s10  }
 0x1da   :  { %792 = vmatpush.msrb.mxu1 %v733_v9  ;;  %1212 = vmatpush.msra.mxu3 %v733_v9 }
 0x1db   :  { %1142 = vmatmul.msk.f32.vlgmr.msrb.gmra.mxu1 %vm741_vm14, %v1526_v38  ;;  %1143 = vmatmul.msk.f32.vlgmr.msra.gmra.mxu3 %vm741_vm14, %v875_v45 }
 0x1e3   :  { %1144 = vmatmul.msk.f32.gmra.mxu3 %vm741_vm14, %v876_v48 }
 0x248   :  { %v768_v20 = vpop.f32.mrf.mxu0 }
 0x249   :  { %v822_v22 = vsel %vm813_vm2, %v768_v20, %v1505_v34 }
 0x24a   :  { %828 = vst [vmem:[#allocation8] sm:$0xff] %v822_v22 }
 0x24e   :  { %v771_v23 = vpop.f32.mrf.mxu2 }
 0x24f   :  { %v824_v25 = vsel %vm814_vm3, %v771_v23, %v1494_v30 }
 0x250   :  { %830 = vst [vmem:[#allocation8 + $0x10] sm:$0xff] %v824_v25 }
 0x256   :  { %v774_v27 = vpop.f32.mrf.mxu2 }
 0x257   :  { %v826_v29 = vsel %vm815_vm4, %v774_v27, %v1473_v0 }
 0x258   :  { %832 = vst [vmem:[#allocation8 + $0x20] sm:$0x3f] %v826_v29  ;;  %v794_v21 = vpop.f32.mrf.mxu1 }
 0x259   :  { %v823_v31 = vsel %vm813_vm2, %v794_v21, %v1508_v14 }
 0x25a   :  { %829 = vst [vmem:[#allocation8 + $0x8] sm:$0xff] %v823_v31 }
 0x25e   :  { %v797_v32 = vpop.f32.mrf.mxu3 }
 0x25f   :  { %v825_v34 = vsel %vm814_vm3, %v797_v32, %v1497_v28 }
 0x260   :  { %831 = vst [vmem:[#allocation8 + $0x18] sm:$0xff] %v825_v34 }
 0x266   :  { %v800_v30 = vpop.f32.mrf.mxu3 }
 0x267   :  { %v827_v0 = vsel %vm815_vm4, %v800_v30, %v1476_v4 }
 0x268   :  { %833 = vst [vmem:[#allocation8 + $0x28] sm:$0x3f] %v827_v0 }
 0x269   :  { %846 = dma.vmem_to_hbm [thread:$0]  %s839_s27, 768, %s841_s30, [#allocation4], %s1363_s9, %s1363_s9, %s1364_s10  }
 0x26a   :  { %1358 = dma.done.wait [#allocation4], 768  }
 0x26b   :  { %1359 = vsyncadd [#allocation4], 4294966528 }
 0x26c   :  { %1360 = dma.done.wait [#allocation10], 512  }
 0x26d   :  { %1361 = vsyncadd [#allocation10], 4294966784 }
 0x26e   :  { %868 = vsyncpa [#allocation3], 1 }
 0x26f   :  { %869 = vsyncpa [#allocation6], 1 }
 0x270   :  { %870 = vsyncpa [#allocation4], 1 }
 0x271   :  { %871 = vsyncpa [#allocation10], 1 }

</bundles_post_ra>
